<compile_context>
chip_gen: v6e
topology: v6e:2x2x1
jax: 0.10.0
libtpu: 0.0.40
codegen_flags: <defaults>
</compile_context>

<pallas_src>
import functools

import jax
import jax.numpy as jnp
from jax import lax
from jax.experimental import pallas as pl
from jax.experimental.pallas import tpu as pltpu

BN_EPS = 1e-5


# ---------------------------------------------------------------------------
# Pass 1: h = x @ W1 (per batch tile) + masked per-tile sum / sum-of-squares.
# ---------------------------------------------------------------------------
def _proj_stats_kernel(x_ref, w1_ref, h_ref, psum_ref, psq_ref, *, tm, n):
    # Plain (TM, dim) @ (dim, pred_dim) contraction; f32 MXU accumulator.
    h = jnp.dot(x_ref[...], w1_ref[...], preferred_element_type=jnp.float32)

    if n % tm != 0:
        # Ragged batch: the last grid step's block overhangs the array; its
        # tail rows contain undefined data.  Mask them out of the statistics
        # (the overhanging h/out stores are dropped by Pallas automatically).
        row = pl.program_id(0) * tm + lax.broadcasted_iota(jnp.int32, (tm, 1), 0)
        hm = jnp.where(row < n, h, 0.0)
    else:
        hm = h  # static skip: no mask cost for tile-aligned batches

    # Statistics from the exact f32 accumulator (before any narrowing cast).
    psum_ref[...] = jnp.sum(hm, axis=0, keepdims=True)[None]        # (1,1,pred)
    psq_ref[...] = jnp.sum(hm * hm, axis=0, keepdims=True)[None]    # (1,1,pred)

    # h round-trips HBM in the (narrow) compute dtype to cut HBM bytes.
    h_ref[...] = h.astype(h_ref.dtype)


# ---------------------------------------------------------------------------
# Pass 2: out = ReLU(h * scale + shift) @ W2 + b2   (per batch tile)
#         scale/shift recomputed per step from the resident per-tile partials
#         (a few-hundred-lane VPU/XLU op, free under the MXU / DMA slack).
# ---------------------------------------------------------------------------
def _bn_relu_out_kernel(h_ref, psum_ref, psq_ref, gamma_ref, beta_ref,
                        w2_ref, b2_ref, o_ref, *, inv_n):
    total = jnp.sum(psum_ref[...], axis=0)          # (1, pred_dim) f32
    total_sq = jnp.sum(psq_ref[...], axis=0)        # (1, pred_dim) f32
    mean = total * inv_n
    var = jnp.maximum(total_sq * inv_n - mean * mean, 0.0)  # biased (training) var
    scale = gamma_ref[...] * lax.rsqrt(var + BN_EPS)
    shift = beta_ref[...] - mean * scale

    h = h_ref[...].astype(jnp.float32)                       # (TM, pred_dim)
    r = jnp.maximum(h * scale + shift, 0.0).astype(w2_ref.dtype)  # BN + ReLU
    out = jnp.dot(r, w2_ref[...], preferred_element_type=jnp.float32)
    o_ref[...] = (out + b2_ref[...]).astype(o_ref.dtype)


# ---------------------------------------------------------------------------
# Wrapper helpers
# ---------------------------------------------------------------------------
def _device_kind():
    try:
        return jax.devices()[0].device_kind.lower()
    except Exception:
        return ""


def _is_v7(kind):
    return "v7" in kind or "7x" in kind


def _round_up(v, m):
    return ((v + m - 1) // m) * m


def _pick_tile_m(n, kind):
    # Per-generation targets: v7x has 64 MiB physical VMEM (but 512-wide tiles
    # fit comfortably); v5e/v6e have 128 MiB.
    if _is_v7(kind):
        target = 512
    elif "v5" in kind:
        target = 512
    else:
        target = 1024
    # Batch-aware cap: keep >= ~4 grid steps so DMA/compute overlap exists and
    # the "parallel" axis can split across v7x's two TensorCores.
    tm = min(target, _round_up(max(pl.cdiv(n, 4), 1), 8))
    return max(8, min(tm, _round_up(n, 8)))


def _vmem_limit_bytes(tm, dim, pred_dim, num_tiles, act_bytes, h_bytes, kind):
    tiles = 2 * tm * (dim * act_bytes + pred_dim * h_bytes + dim * act_bytes)
    weights = 2 * 2 * dim * pred_dim * act_bytes          # W1 + W2, double-buffered
    stats = 2 * 2 * num_tiles * pred_dim * 4              # psum/psq resident (pass 2)
    vectors = 2 * 4 * (dim + 3 * pred_dim) * 4
    need = tiles + weights + stats + vectors + (4 << 20)
    cap = (48 << 20) if _is_v7(kind) else (100 << 20)
    return int(min(max(need, 16 << 20), cap))


def predictor_forward(x, w1, gamma, beta, w2, b2, *, tile_m=None,
                      compute_dtype=jnp.bfloat16):
    """Predictor forward.

    x:  (N, dim)             activations
    w1: (pred_dim, dim)      nn.Linear(dim, pred_dim, bias=False).weight
    gamma, beta: (pred_dim,) nn.BatchNorm1d(pred_dim) weight / bias
    w2: (dim, pred_dim)      nn.Linear(pred_dim, dim).weight
    b2: (dim,)               nn.Linear(pred_dim, dim).bias
    compute_dtype: matmul / h-roundtrip dtype (default bf16; pass jnp.float32
                   to opt out).  BN stats and accumulation are always f32.
    """
    n, dim = x.shape
    pred_dim = w1.shape[0]
    kind = _device_kind()

    compute_dtype = jnp.dtype(compute_dtype)
    out_dtype = x.dtype

    # One-off wrapper-side casts / transposes (amortized over the whole batch;
    # pre-transposing puts both matmuls in plain (TM,K)@(K,N) form).
    x_c = x if x.dtype == compute_dtype else x.astype(compute_dtype)
    w1c = jnp.asarray(w1, compute_dtype).T                  # (dim, pred_dim)
    w2c = jnp.asarray(w2, compute_dtype).T                  # (pred_dim, dim)
    gamma2 = jnp.asarray(gamma, jnp.float32).reshape(1, pred_dim)
    beta2 = jnp.asarray(beta, jnp.float32).reshape(1, pred_dim)
    b2_2 = jnp.asarray(b2, jnp.float32).reshape(1, dim)

    if tile_m is None:
        tm = _pick_tile_m(n, kind)
    else:
        tm = max(8, _round_up(min(tile_m, _round_up(n, 8)), 8))
    num_tiles = pl.cdiv(n, tm)

    h_dtype = compute_dtype  # narrow HBM round-trip for the intermediate

    vmem_limit = _vmem_limit_bytes(tm, dim, pred_dim, num_tiles,
                                   compute_dtype.itemsize,
                                   jnp.dtype(h_dtype).itemsize, kind)
    cparams = pltpu.CompilerParams(
        dimension_semantics=("parallel",),
        vmem_limit_bytes=vmem_limit,
    )

    # ---- Pass 1: projection + masked per-tile batch statistics -------------
    h, psum, psq = pl.pallas_call(
        functools.partial(_proj_stats_kernel, tm=tm, n=n),
        grid=(num_tiles,),
        in_specs=[
            pl.BlockSpec((tm, dim), lambda i: (i, 0)),           # x tile (pipelined)
            pl.BlockSpec((dim, pred_dim), lambda i: (0, 0)),     # W1 resident
        ],
        out_specs=(
            pl.BlockSpec((tm, pred_dim), lambda i: (i, 0)),      # h tile
            pl.BlockSpec((1, 1, pred_dim), lambda i: (i, 0, 0)),  # per-tile sum
            pl.BlockSpec((1, 1, pred_dim), lambda i: (i, 0, 0)),  # per-tile sumsq
        ),
        out_shape=(
            jax.ShapeDtypeStruct((n, pred_dim), h_dtype),
            jax.ShapeDtypeStruct((num_tiles, 1, pred_dim), jnp.float32),
            jax.ShapeDtypeStruct((num_tiles, 1, pred_dim), jnp.float32),
        ),
        compiler_params=cparams,
    )(x_c, w1c)

    # ---- Pass 2: in-kernel stats reduction + BN/ReLU + output projection ---
    out = pl.pallas_call(
        functools.partial(_bn_relu_out_kernel, inv_n=1.0 / n),
        grid=(num_tiles,),
        in_specs=[
            pl.BlockSpec((tm, pred_dim), lambda i: (i, 0)),            # h tile
            pl.BlockSpec((num_tiles, 1, pred_dim), lambda i: (0, 0, 0)),  # psum resident
            pl.BlockSpec((num_tiles, 1, pred_dim), lambda i: (0, 0, 0)),  # psq resident
            pl.BlockSpec((1, pred_dim), lambda i: (0, 0)),             # gamma resident
            pl.BlockSpec((1, pred_dim), lambda i: (0, 0)),             # beta resident
            pl.BlockSpec((pred_dim, dim), lambda i: (0, 0)),           # W2 resident
            pl.BlockSpec((1, dim), lambda i: (0, 0)),                  # b2 resident
        ],
        out_specs=pl.BlockSpec((tm, dim), lambda i: (i, 0)),
        out_shape=jax.ShapeDtypeStruct((n, dim), out_dtype),
        compiler_params=cparams,
    )(h, psum, psq, gamma2, beta2, w2c, b2_2)

    return out


def reference_forward(x, w1, gamma, beta, w2, b2):
    h = x @ w1.T
    mean = h.mean(axis=0, keepdims=True)
    var = ((h - mean) ** 2).mean(axis=0, keepdims=True)
    hn = (h - mean) / jnp.sqrt(var + BN_EPS) * gamma + beta
    r = jnp.maximum(hn, 0.0)
    return r @ w2.T + b2


if __name__ == "__main__":
    # Small demo shapes.  The auto tile picker gives TM=16 -> 4 grid steps, so
    # the tiled path (per-tile stats + resident weights) is actually exercised.
    N, dim, pred_dim = 64, 32, 8

    key = jax.random.PRNGKey(0)
    kx, kw1, kw2, kb2 = jax.random.split(key, 4)

    x = jax.random.normal(kx, (N, dim), dtype=jnp.float32)

    # Deterministic synthetic parameters (PyTorch-like uniform fan-in init).
    bound1 = 1.0 / (dim ** 0.5)
    w1 = jax.random.uniform(kw1, (pred_dim, dim), jnp.float32, -bound1, bound1)
    gamma = jnp.ones((pred_dim,), jnp.float32)   # BatchNorm1d weight init
    beta = jnp.zeros((pred_dim,), jnp.float32)   # BatchNorm1d bias init
    bound2 = 1.0 / (pred_dim ** 0.5)
    w2 = jax.random.uniform(kw2, (dim, pred_dim), jnp.float32, -bound2, bound2)
    b2 = jax.random.uniform(kb2, (dim,), jnp.float32, -bound2, bound2)

    ref = reference_forward(x, w1, gamma, beta, w2, b2)

    # 1) f32 opt-out path: tight check against the pure-JAX reference.
    out_f32 = jax.block_until_ready(
        predictor_forward(x, w1, gamma, beta, w2, b2, compute_dtype=jnp.float32))
    assert out_f32.shape == (N, dim)
    assert jnp.allclose(out_f32, ref, atol=1e-4, rtol=1e-4), "f32 mismatch vs reference"

    # 2) default bf16 compute path (prod config): loose tolerance — expected
    #    quantization from bf16 matmuls and the bf16 h round-trip.
    out_bf16 = jax.block_until_ready(predictor_forward(x, w1, gamma, beta, w2, b2))
    assert out_bf16.shape == (N, dim)
    assert jnp.allclose(out_bf16, ref, atol=1e-1, rtol=1e-1), "bf16 mismatch vs reference"

    # 3) ragged batch (N not a multiple of the tile): exercises the masked-stats
    #    / partial-edge-block path (no jnp.pad copy of x, no padded output).
    n2 = 29
    out_r = jax.block_until_ready(
        predictor_forward(x[:n2], w1, gamma, beta, w2, b2, compute_dtype=jnp.float32))
    ref_r = reference_forward(x[:n2], w1, gamma, beta, w2, b2)
    assert out_r.shape == (n2, dim)
    assert jnp.allclose(out_r, ref_r, atol=1e-4, rtol=1e-4), "ragged mismatch vs reference"

    print("KERNEL_OK")
</pallas_src>

<mosaic_0001>
module attributes {stable_mosaic.version = 11 : i64} {
  func.func @_proj_stats_kernel(%arg0: i32, %arg1: memref<16x32xf32, #tpu.memory_space<vmem>>, %arg2: memref<32x8xf32, #tpu.memory_space<vmem>>, %arg3: memref<16x8xf32, #tpu.memory_space<vmem>>, %arg4: memref<1x1x8xf32, #tpu.memory_space<vmem>>, %arg5: memref<1x1x8xf32, #tpu.memory_space<vmem>>) attributes {dimension_semantics = [#tpu.dimension_semantics<parallel>], iteration_bounds = array<i64: 4>, scalar_prefetch = 0 : i64, scratch_operands = 0 : i64, tpu.core_type = #tpu.core_type<tc>, window_params = [{transform_indices = @transform_0, window_bounds = array<i64: 16, 32>}, {pipeline_mode = #tpu.pipeline_mode<synchronous>, transform_indices = @transform_1, window_bounds = array<i64: 32, 8>}, {transform_indices = @transform_2, window_bounds = array<i64: 16, 8>}, {transform_indices = @transform_3, window_bounds = array<i64: 1, 1, 8>}, {transform_indices = @transform_4, window_bounds = array<i64: 1, 1, 8>}]} {
    %c0 = arith.constant 0 : index
    %c0_0 = arith.constant 0 : index
    %0 = vector.load %arg1[%c0, %c0_0] : memref<16x32xf32, #tpu.memory_space<vmem>>, vector<16x32xf32>
    %c0_1 = arith.constant 0 : index
    %c0_2 = arith.constant 0 : index
    %1 = vector.load %arg2[%c0_1, %c0_2] : memref<32x8xf32, #tpu.memory_space<vmem>>, vector<32x8xf32>
    %cst = arith.constant dense<0.000000e+00> : vector<16x8xf32>
    %2 = tpu.matmul %0, %1, %cst {dimension_numbers = #tpu.dot_dimension_numbers<[1], [0], [0], [1], [0, 0, 1, 1], [], []>} : vector<16x32xf32>, vector<32x8xf32>, vector<16x8xf32> -> vector<16x8xf32>
    %cst_3 = arith.constant dense<0.000000e+00> : vector<8xf32>
    %3 = vector.multi_reduction <add>, %2, %cst_3 [0] : vector<16x8xf32> to vector<8xf32>
    %4 = vector.shape_cast %3 : vector<8xf32> to vector<1x8xf32>
    %5 = vector.shape_cast %4 : vector<1x8xf32> to vector<1x1x8xf32>
    %c0_4 = arith.constant 0 : index
    %c0_5 = arith.constant 0 : index
    %c0_6 = arith.constant 0 : index
    %6 = vector.load %arg4[%c0_4, %c0_5, %c0_6] : memref<1x1x8xf32, #tpu.memory_space<vmem>>, vector<1x1x8xf32>
    tpu.vector_store %arg4[%c0_4, %c0_5, %c0_6], %5 {strides = array<i32>} : memref<1x1x8xf32, #tpu.memory_space<vmem>>, vector<1x1x8xf32>,
    %7 = arith.mulf %2, %2 : vector<16x8xf32>
    %cst_7 = arith.constant dense<0.000000e+00> : vector<8xf32>
    %8 = vector.multi_reduction <add>, %7, %cst_7 [0] : vector<16x8xf32> to vector<8xf32>
    %9 = vector.shape_cast %8 : vector<8xf32> to vector<1x8xf32>
    %10 = vector.shape_cast %9 : vector<1x8xf32> to vector<1x1x8xf32>
    %c0_8 = arith.constant 0 : index
    %c0_9 = arith.constant 0 : index
    %c0_10 = arith.constant 0 : index
    %11 = vector.load %arg5[%c0_8, %c0_9, %c0_10] : memref<1x1x8xf32, #tpu.memory_space<vmem>>, vector<1x1x8xf32>
    tpu.vector_store %arg5[%c0_8, %c0_9, %c0_10], %10 {strides = array<i32>} : memref<1x1x8xf32, #tpu.memory_space<vmem>>, vector<1x1x8xf32>,
    %c0_11 = arith.constant 0 : index
    %c0_12 = arith.constant 0 : index
    %12 = vector.load %arg3[%c0_11, %c0_12] : memref<16x8xf32, #tpu.memory_space<vmem>>, vector<16x8xf32>
    tpu.vector_store %arg3[%c0_11, %c0_12], %2 {strides = array<i32>} : memref<16x8xf32, #tpu.memory_space<vmem>>, vector<16x8xf32>,
    return
  }
  func.func @transform_0(%arg0: i32) -> (i32, i32) {
    %c0_i32 = arith.constant 0 : i32
    %c0_i32_0 = arith.constant 0 : i32
    return %arg0, %c0_i32 : i32, i32
  }
  func.func @transform_1(%arg0: i32) -> (i32, i32) {
    %c0_i32 = arith.constant 0 : i32
    %c0_i32_0 = arith.constant 0 : i32
    %c0_i32_1 = arith.constant 0 : i32
    return %c0_i32, %c0_i32_0 : i32, i32
  }
  func.func @transform_2(%arg0: i32) -> (i32, i32) {
    %c0_i32 = arith.constant 0 : i32
    %c0_i32_0 = arith.constant 0 : i32
    return %arg0, %c0_i32 : i32, i32
  }
  func.func @transform_3(%arg0: i32) -> (i32, i32, i32) {
    %c0_i32 = arith.constant 0 : i32
    %c0_i32_0 = arith.constant 0 : i32
    %c0_i32_1 = arith.constant 0 : i32
    return %arg0, %c0_i32, %c0_i32_0 : i32, i32, i32
  }
  func.func @transform_4(%arg0: i32) -> (i32, i32, i32) {
    %c0_i32 = arith.constant 0 : i32
    %c0_i32_0 = arith.constant 0 : i32
    %c0_i32_1 = arith.constant 0 : i32
    return %arg0, %c0_i32, %c0_i32_0 : i32, i32, i32
  }
}

</mosaic_0001>

<bundles_post_ra>
// kernel: tpu_custom_call.1
= control target key start
LH: loop header
LB: loop body
LE: loop exit
PB: predicated region body
PF: predicated region fallthrough
CT: control target
= control target key end

     0   :  { %10 = vsyncpa [#allocation3], 0  ;;  %s827_s0 = inlined_call_operand.vmem [shape: f32[64,32], index: 0, kind: input, shape index: {}]   ;;  %s828_s1 = inlined_call_operand.vmem [shape: f32[32,8], index: 1, kind: input, shape index: {}]   ;;  %s829_s2 = inlined_call_operand.vmem [shape: f32[64,8], index: 2, kind: output, shape index: {0}]   ;;  %s830_s3 = inlined_call_operand.hbm [shape: f32[4,1,8], index: 3, kind: output, shape index: {1}]   ;;  %s831_s4 = inlined_call_operand.hbm [shape: f32[4,1,8], index: 4, kind: output, shape index: {2}]  }
   0x1   :  { %12 = vsyncpa [#allocation3 + $0x1], 0 }
   0x2   :  { %13 = vsyncpa [#allocation5], 0 }
   0x3   :  { %15 = vsyncpa [#allocation5 + $0x1], 0  ;;  %s675_s15 = smov 0   ;;  %s677_s16 = smov 0  }
   0x4   :  { %s679_s17 = smov 0   ;;  %s681_s18 = smov 0  }
   0x5 LB: > { %s696_s19 = sadd.s32 4294967295, %s646_s18   ;;  %s481_s20 = sadd.s32 4294967294, %s646_s18   ;;  %s646_s18 = sphi %s681_s18, %s837_s18   ;;  %s642_s17 = sphi %s679_s17, %s836_s17   ;;  %s638_s16 = sphi %s677_s16, %s835_s16   ;;  %s634_s15 = sphi %s675_s15, %s834_s15  }
   0x6   : > { %s700_s21 = sadd.s32 1, %s646_s18   ;;  %s101_s22 = sadd.s32 1, %s642_s17 }
   0x7   : > { %s98_s23 = ssub.s32 %s646_s18, %s700_s21  ;;  %p111_p0 = scmp.ne.s32.totalorder %s642_s17, %s638_s16 }
   0x8   : > { %p99_p1 = scmp.eq.s32.totalorder %s98_s23, 0  ;;  %p112_p2 = scmp.eq.s32.totalorder %s696_s19, 3 }
   0x9   : > { %p117_p3 = scmp.ne.s32.totalorder %s638_s16, %s634_s15  ;;  %p118_p4 = scmp.eq.s32.totalorder %s481_s20, 3 }
   0xa   : > { %s711_s24 = scalar_select %p99_p1, %s642_s17, %s101_s22  }
   0xb   : > { %p713_p5 = por %p112_p2, %p111_p0  ;;  %p717_p6 = por %p118_p4, %p117_p3 }
   0xc   : > { %p484_p7 = scmp.ge.s32.totalorder %s646_s18, 1  ;;  %p174_p8 = scmp.lt.s32.totalorder %s646_s18, 5 }
   0xe   : > { %p175_p9 = pnand %p484_p7, %p174_p8 }
   0xf   : > { %s485_s5 = sshll.u32 (!%p175_p9), %s696_s19, 1  ;;  %s743_s23 = sand.u32 (!%p175_p9), 1, %s638_s16  }
  0x10   : > { %178 = sbr.rel (%p175_p9) target bundleno = 275 (0x113), region = 28  ;;  %p209_p10 = scmp.lt.s32.totalorder (!%p175_p9), %s485_s5, 7 }
  0x11   : > { %s491_s27 = sshll.u32 (!%p175_p9), %s696_s19, 4  ;;  %s201_s28 = scalar_lea.vmem (!%p175_p9), [#allocation2], %s743_s23 }
  0x12   : > { %s360_s29 = sshll.u32 (!%p175_p9), %s201_s28, 4  ;;  %s207_s30 = scalar_lea.vmem (!%p175_p9), [#allocation4], %s743_s23  ;;  %s755_s29 = int_to_ptr.vmem [resolvable:$true] %s360_s29 }
  0x13   : > { %s753_s8 = scalar_lea.hbm (!%p175_p9), %s830_s3, %s491_s27  ;;  %s340_s11 = scalar_lea.sflag (!%p175_p9), [#allocation3], %s743_s23 }
  0x14   : > { %s556_s12 = scalar_lea.vmem (!%p175_p9), %s755_s29, 16 }
  0x15   : > { %v225_v0 = vld [vmem:[%s828_s1 + $0x18] sm:$0xff]  ;;  %v224_v1 = vld [vmem:[%s828_s1 + $0x10] sm:$0xff]  ;;  %v223_v2 = vld [vmem:[%s828_s1 + $0x8] sm:$0xff]  ;;  %s839_s5 = smov (!%p209_p10, %s485_s5), 7  ;;  %vm226_vm0 = vcmask 261120   ;;  %vm308_vm1 = vcmask 64512   ;;  %p557_p11 = scmp.ne.s32.totalorder %s755_s29, %s556_s12 }
  0x16   : > { %501 = vmatprep.subr.mxu0 %v225_v0  ;;  %v222_v3 = vld [vmem:[%s828_s1] sm:$0xff]  ;;  %s486_s10 = sshll.u32 %s839_s5, 3  ;;  %vm318_vm2 = vcmask 57344   ;;  %s373_s5 = sshll.u32 %s207_s30, 4  ;;  %s763_s5 = int_to_ptr.vmem [resolvable:$true] %s373_s5 }
  0x17   : > { %502 = vmatpush3.msra.mxu0 %v225_v0  ;;  %s212_s13 = scalar_lea.vmem %s827_s0, %s486_s10  ;;  %s218_s22 = scalar_lea.vmem %s829_s2, %s486_s10 }
  0x18   : > { %503 = vmatprep.subr.mxu0 %v224_v1  ;;  %v220_v4 = vld [vmem:[%s212_s13] sm:$0xff]  ;;  %v221_v5 = vld [vmem:[%s212_s13 + $0x8] sm:$0xff]  ;;  %s761_s10 = scalar_lea.hbm %s831_s4, %s491_s27  ;;  %p558_p12 = pnand %p557_p11, %p713_p5 }
  0x19   : > { %504 = vmatpush3.msra.mxu0 %v224_v1  ;;  %509 = vmatprep.mubr.msk.f32.mxu0 %vm226_vm0, %v220_v4  ;;  %s648_s13 = smov [#allocation2]  }
  0x1a   : > { %505 = vmatprep.subr.mxu0 %v223_v2  ;;  %p559_p13 = pneg %p558_p12  ;;  %s560_s14 = sshll.u32 %s648_s13, 4  ;;  %s561_s14 = int_to_ptr.vmem [resolvable:$false] %s560_s14 }
  0x1b   : > { %506 = vmatpush3.msra.mxu0 %v223_v2  ;;  %s562_s20 = scalar_lea.vmem %s561_s14, 32  ;;  %p563_p0 = scmp.lt.s32.totalorder %s755_s29, %s561_s14 }
  0x1c   : > { %507 = vmatprep.subr.mxu0 %v222_v3  ;;  %p564_p1 = scmp.lt.s32.totalorder %s562_s20, %s556_s12 }
  0x1d   : > { %508 = vmatpush3.msra.mxu0 %v222_v3 }
  0x1e   : > { %510 = vmatmul.mubr.msk.f32.vlgmr.msra.gmra.mxu0 %vm226_vm0, %v221_v5  ;;  %p565_p2 = por %p564_p1, %p563_p0 }
  0x20   : > { %p566_p3 = pnand %p565_p2, %p559_p13 }
  0xde   : > { %v511_v6 = vpop.f32.mrf.mxu0 }
  0xdf   : > { %v321_v7 = vmul.f32 %v511_v6, %v511_v6  ;;  %v310_v9 = vsel %vm308_vm1, %v511_v6, 0.0  ;;  %333 = vst.msk [vmem:[%s218_s22 + $0x8] sm:$0xff] %vm308_vm1, %v511_v6 }
  0xe0   : > { %v299_v8 = vpop.f32.mrf.mxu0 }
  0xe1   : > { %v309_v10 = vsel %vm308_vm1, %v299_v8, 0.0  ;;  %v320_v11 = vmul.f32 %v299_v8, %v299_v8  ;;  %332 = vst.msk [vmem:[%s218_s22] sm:$0xff] %vm308_vm1, %v299_v8  ;;  %v323_v13 = vsel %vm308_vm1, %v321_v7, 0.0 }
  0xe2   : > { %v311_v12 = vadd.f32 %v310_v9, %v309_v10 }
  0xe3   : > { %v322_v14 = vsel %vm308_vm1, %v320_v11, 0.0 }
  0xe4   : > { %v312_v15 = vrot.slane %v311_v12, 4  ;;  %v324_v16 = vadd.f32 %v323_v13, %v322_v14 }
  0xe6   : > { %v313_v17 = vadd.f32 %v312_v15, %v311_v12  ;;  %v325_v18 = vrot.slane %v324_v16, 4 }
  0xe8   : > { %v314_v19 = vrot.slane %v313_v17, 2  ;;  %v326_v20 = vadd.f32 %v325_v18, %v324_v16 }
  0xea   : > { %v315_v21 = vadd.f32 %v314_v19, %v313_v17  ;;  %v327_v22 = vrot.slane %v326_v20, 2 }
  0xec   : > { %v316_v23 = vrot.slane %v315_v21, 1  ;;  %v328_v24 = vadd.f32 %v327_v22, %v326_v20 }
  0xee   : > { %v317_v25 = vadd.f32 %v316_v23, %v315_v21  ;;  %v329_v26 = vrot.slane %v328_v24, 1 }
  0xf0   : > { %319 = vst.msk [vmem:[%s201_s28] sm:$0x1] %vm318_vm2, %v317_v25  ;;  %v330_v27 = vadd.f32 %v329_v26, %v328_v24 }
  0xf1   : > { %569 = shalt.err (!%p566_p3)
}
  0xf2   : > { %s570_s22 = scalar_lea.hbm %s753_s8, 16  ;;  %s574_s6 = scalar_lea.hbm %s830_s3, 64 }
  0xf3   : > { %p571_p4 = scmp.ne.s32.totalorder %s753_s8, %s570_s22  ;;  %p575_p9 = scmp.lt.s32.totalorder %s753_s8, %s830_s3 }
  0xf4   : > { %p576_p10 = scmp.lt.s32.totalorder %s574_s6, %s570_s22 }
  0xf5   : > { %p572_p7 = pnand %p571_p4, %p713_p5 }
  0xf6   : > { %p577_p11 = por %p576_p10, %p575_p9 }
  0xf7   : > { %p573_p8 = pneg %p572_p7 }
  0xf9   : > { %p578_p12 = pnand %p577_p11, %p573_p8 }
  0xfb   : > { %581 = shalt.err (!%p578_p12)
}
  0xfc   : > { %512 = dma.vmem_to_hbm [thread:$0]  (%p713_p5), %s755_s29, 16, %s753_s8, %s340_s11   ;;  %331 = vst.msk [vmem:[%s207_s30] sm:$0x1] %vm318_vm2, %v330_v27 }
  0xfd   : > { %s344_s9 = scalar_lea.sflag [#allocation5], %s743_s23  ;;  %s582_s12 = scalar_lea.vmem %s763_s5, 16 }
  0xfe   : > { %p583_p13 = scmp.ne.s32.totalorder %s763_s5, %s582_s12  ;;  %s649_s13 = smov [#allocation4]  }
  0xff   : > { %s586_s14 = sshll.u32 %s649_s13, 4  ;;  %s587_s14 = int_to_ptr.vmem [resolvable:$false] %s586_s14 }
 0x100   : > { %p584_p0 = pnand %p583_p13, %p713_p5  ;;  %s588_s20 = scalar_lea.vmem %s587_s14, 32 }
 0x101   : > { %p589_p2 = scmp.lt.s32.totalorder %s763_s5, %s587_s14  ;;  %p590_p3 = scmp.lt.s32.totalorder %s588_s20, %s582_s12 }
 0x102   : > { %p585_p1 = pneg %p584_p0 }
 0x103   : > { %p591_p4 = por %p590_p3, %p589_p2 }
 0x105   : > { %p592_p7 = pnand %p591_p4, %p585_p1 }
 0x107   : > { %595 = shalt.err (!%p592_p7)
}
 0x108   : > { %s596_s29 = scalar_lea.hbm %s761_s10, 16  ;;  %s600_s8 = scalar_lea.hbm %s831_s4, 64 }
 0x109   : > { %p597_p8 = scmp.ne.s32.totalorder %s761_s10, %s596_s29  ;;  %p601_p11 = scmp.lt.s32.totalorder %s761_s10, %s831_s4 }
 0x10a   : > { %p602_p12 = scmp.lt.s32.totalorder %s600_s8, %s596_s29 }
 0x10b   : > { %p598_p9 = pnand %p597_p8, %p713_p5 }
 0x10c   : > { %p603_p13 = por %p602_p12, %p601_p11 }
 0x10d   : > { %p599_p10 = pneg %p598_p9 }
 0x10f   : > { %p604_p0 = pnand %p603_p13, %p599_p10 }
 0x111   : > { %607 = shalt.err (!%p604_p0)
}
 0x112   : > { %513 = dma.vmem_to_hbm [thread:$0]  (%p713_p5), %s763_s5, 16, %s761_s10, %s344_s9  }
 0x113 PF: > { %p523_p1 = scmp.ge.s32.totalorder %s646_s18, 2  ;;  %s393_s27 = sand.u32 1, %s634_s15  }
 0x114   : > { %s394_s28 = scalar_lea.sflag [#allocation3], %s393_s27 }
 0x115   : > { %p517_p2 = pnand %p523_p1, %p717_p6 }
 0x117   : > { %p518_p3 = pneg %p517_p2 }
 0x119   : > { %625 = dma.done.wait (%p518_p3), %s394_s28, 16  }
 0x11a   : > { %627 = vsyncadd (%p518_p3), %s394_s28, 4294967280  ;;  %s402_s6 = scalar_lea.sflag [#allocation5], %s393_s27 }
 0x11b   : > { %629 = dma.done.wait (%p518_p3), %s402_s6, 16  }
 0x11c   : > { %631 = vsyncadd (%p518_p3), %s402_s6, 4294967280  ;;  %p18_p5 = scmp.ge.s32.totalorder %s700_s21, 6   ;;  %s834_s15 = smov %s638_s16 }
 0x11d   : > { %s835_s16 = smov %s642_s17  ;;  %s836_s17 = smov %s711_s24 }
 0x11e   : > { %s837_s18 = smov %s700_s21  ;;  %20 = sbr.rel (!%p18_p5) target bundleno = 5 (0x5), region = 92 }
 0x123   :  { %406 = vsyncpa [#allocation3], 1 }
 0x124   :  { %408 = vsyncpa [#allocation3 + $0x1], 1 }
 0x125   :  { %409 = vsyncpa [#allocation5], 1 }
 0x126   :  { %411 = vsyncpa [#allocation5 + $0x1], 1 }

</bundles_post_ra>
